<compile_context>
chip_gen: v6e
topology: v6e:2x2x1
jax: 0.10.0
libtpu: 0.0.40
codegen_flags: <defaults>
</compile_context>

<pallas_src>
import functools

import jax
import jax.numpy as jnp
from jax import lax
from jax.experimental import pallas as pl
from jax.experimental.pallas import tpu as pltpu


# ---------------------------------------------------------------------------
# Kernels (one grid axis over row tiles; per-block partial outputs)
# ---------------------------------------------------------------------------
def _sum_kernel(scores_ref, dcol_ref, drow_ref, colsum_ref, *, n, tm, ragged):
    """max_violation=False: per-block column-sum partials of cost_s + cost_im."""
    i = pl.program_id(0)

    s = scores_ref[...].astype(jnp.float32)                    # (TM, N)
    start = pl.multiple_of(i * tm, tm)
    dcol = dcol_ref[pl.ds(start, tm), :]                       # (TM, 1), f32, diag - margin
    drow = drow_ref[...]                                       # (1, N),  f32, diag - margin

    # Fused pass: sum(cost_s) + sum(cost_im) == sum(cost_s + cost_im).
    total = jnp.maximum(s - dcol, 0.0) + jnp.maximum(s - drow, 0.0)

    if ragged:  # static: only emit the row mask when the last tile is ragged
        rows = lax.broadcasted_iota(jnp.int32, total.shape, 0) + i * tm
        total = jnp.where(rows < n, total, 0.0)                # select, not multiply

    # Sublane reduce only; the lane reduce happens once in the JAX epilogue.
    colsum_ref[...] = jnp.sum(total, axis=0, keepdims=True).reshape(1, 1, total.shape[1])


def _max_kernel(scores_ref, dcol_ref, drow_ref, rowsum_ref, colmax_ref,
                *, n, tm, ragged):
    """max_violation=True (VSE++): per-block row-max-sum and column-max partials."""
    i = pl.program_id(0)

    s = scores_ref[...].astype(jnp.float32)                    # (TM, N)
    start = pl.multiple_of(i * tm, tm)
    dcol = dcol_ref[pl.ds(start, tm), :]                       # (TM, 1)
    drow = drow_ref[...]                                       # (1, N)

    rows = lax.broadcasted_iota(jnp.int32, s.shape, 0) + i * tm
    cols = lax.broadcasted_iota(jnp.int32, s.shape, 1)
    kill = rows == cols                                        # diagonal excluded from max
    if ragged:                                                 # static
        kill = jnp.logical_or(kill, rows >= n)                 # padded (OOB) rows

    # Single select: killed entries become a huge negative, both hinges clamp to 0.
    s = jnp.where(kill, jnp.float32(-3e38), s)
    cost_s = jnp.maximum(s - dcol, 0.0)                        # caption retrieval
    cost_im = jnp.maximum(s - drow, 0.0)                       # image retrieval

    rowmax = jnp.max(cost_s, axis=1, keepdims=True)            # (TM, 1) lane reduce
    rowsum_ref[...] = jnp.sum(rowmax).reshape(1, 1, 1)
    colmax_ref[...] = jnp.max(cost_im, axis=0, keepdims=True).reshape(1, 1, s.shape[1])


# ---------------------------------------------------------------------------
# Tile / VMEM budgeting
# ---------------------------------------------------------------------------
def _choose_tile(n, itemsize, tile_rows=None):
    """Pick a row tile (dtype-aware) and a scoped-VMEM budget for this chip."""
    try:
        vmem_cap = int(pltpu.get_tpu_info().vmem_capacity_bytes)
    except Exception:  # pragma: no cover - conservative fallback (v7x = smallest)
        vmem_cap = 64 * 1024 * 1024
    budget = int(min(vmem_cap // 2, 64 * 1024 * 1024))          # scoped VMEM we request

    itemsize = int(itemsize)
    row_mult = 8 * max(1, 4 // max(1, itemsize))                # 8 f32 / 16 bf16 / 32 int8
    n_ceil = -(-n // row_mult) * row_mult

    if tile_rows is not None:
        tm = -(-int(tile_rows) // row_mult) * row_mult
    else:
        # Per-step VMEM ~= 2x input tile (double buffer) + ~4x f32 temporaries
        # + resident diag inputs / partial outputs + slack.
        resident = 4 * n * 4 + (2 << 20)
        per_row = n * (2 * itemsize + 4 * 4)
        tm = max(row_mult, (budget - resident) // max(1, per_row))
        tm = min(tm, 1024, max(row_mult, (8 << 20) // max(1, n * itemsize)))
        tm = max(row_mult, (tm // row_mult) * row_mult)

    tm = min(tm, n_ceil)
    num_blocks = -(-n // tm)
    return tm, num_blocks, budget


# ---------------------------------------------------------------------------
# Wrapper
# ---------------------------------------------------------------------------
def contrastive_loss(scores, margin=0.2, max_violation=False, tile_rows=None):
    """Pallas equivalent of MyContrastiveLoss.forward(scores)."""
    n = scores.shape[0]
    assert scores.shape == (n, n), "scores must be a square (N, N) matrix"
    margin = float(margin)
    itemsize = jnp.dtype(scores.dtype).itemsize

    tm, num_blocks, vmem_budget = _choose_tile(n, itemsize, tile_rows)
    ragged = (n % tm) != 0
    n_pad = num_blocks * tm

    # Tiny O(N) precompute: margin folded into the diagonal, kept in f32.
    diag_adj = jnp.diagonal(scores).astype(jnp.float32) - margin
    drow_in = diag_adj.reshape(1, n)                            # resident row
    dcol_in = diag_adj.reshape(n, 1)                            # resident column
    if n_pad > n:                                               # O(N) pad only (never the matrix)
        dcol_in = jnp.pad(dcol_in, ((0, n_pad - n), (0, 0)))

    in_specs = [
        pl.BlockSpec((tm, n), lambda i: (i, 0)),                # streamed scores row tile
        pl.BlockSpec((n_pad, 1), lambda i: (0, 0)),             # resident diag (column)
        pl.BlockSpec((1, n), lambda i: (0, 0)),                 # resident diag (row)
    ]

    cost = pl.CostEstimate(
        flops=8 * n * n,
        transcendentals=0,
        bytes_accessed=n * n * itemsize + 3 * n * 4 + num_blocks * (n + 1) * 4,
    )
    cparams = pltpu.CompilerParams(
        dimension_semantics=("parallel",),                      # revisit-free -> v7x dual-TC
        vmem_limit_bytes=vmem_budget,
    )

    if max_violation:
        kernel = functools.partial(_max_kernel, n=n, tm=tm, ragged=ragged)
        rowsum, colmax = pl.pallas_call(
            kernel,
            out_shape=(jax.ShapeDtypeStruct((num_blocks, 1, 1), jnp.float32),
                       jax.ShapeDtypeStruct((num_blocks, 1, n), jnp.float32)),
            grid_spec=pltpu.PrefetchScalarGridSpec(
                num_scalar_prefetch=0,
                grid=(num_blocks,),
                in_specs=in_specs,
                out_specs=(pl.BlockSpec((1, 1, 1), lambda i: (i, 0, 0)),
                           pl.BlockSpec((1, 1, n), lambda i: (i, 0, 0))),
            ),
            compiler_params=cparams,
            cost_estimate=cost,
        )(scores, dcol_in, drow_in)
        # Tiny JAX epilogue: O(num_blocks * N).
        return jnp.sum(rowsum) + jnp.sum(jnp.max(colmax, axis=0))

    kernel = functools.partial(_sum_kernel, n=n, tm=tm, ragged=ragged)
    colsum = pl.pallas_call(
        kernel,
        out_shape=jax.ShapeDtypeStruct((num_blocks, 1, n), jnp.float32),
        grid_spec=pltpu.PrefetchScalarGridSpec(
            num_scalar_prefetch=0,
            grid=(num_blocks,),
            in_specs=in_specs,
            out_specs=pl.BlockSpec((1, 1, n), lambda i: (i, 0, 0)),
        ),
        compiler_params=cparams,
        cost_estimate=cost,
    )(scores, dcol_in, drow_in)
    # Each diagonal entry contributed max(margin, 0) to cost_s and to cost_im.
    return jnp.sum(colsum) - 2.0 * n * max(margin, 0.0)


# ---------------------------------------------------------------------------
# Pure-JAX reference (mirrors the PyTorch module)
# ---------------------------------------------------------------------------
def _reference_loss(scores, margin=0.2, max_violation=False):
    scores = scores.astype(jnp.float32)
    diag = jnp.diag(scores).reshape(-1, 1)
    cost_s = jnp.maximum(margin + scores - diag, 0.0)
    cost_im = jnp.maximum(margin + scores - diag.T, 0.0)
    eye = jnp.eye(scores.shape[0], dtype=bool)
    cost_s = jnp.where(eye, 0.0, cost_s)
    cost_im = jnp.where(eye, 0.0, cost_im)
    if max_violation:
        return jnp.sum(jnp.max(cost_s, axis=1)) + jnp.sum(jnp.max(cost_im, axis=0))
    return jnp.sum(cost_s) + jnp.sum(cost_im)


# ---------------------------------------------------------------------------
# Self-test
# ---------------------------------------------------------------------------
if __name__ == "__main__":
    key = jax.random.PRNGKey(0)

    # (N, tile_rows): single auto block / ragged single block / ragged multi-block /
    # aligned multi-block / bigger auto-tiled case.
    configs = [(8, None), (20, None), (20, 8), (32, 8), (128, None)]
    for n, tile_rows in configs:
        key, sub = jax.random.split(key)
        scores = jax.random.normal(sub, (n, n), dtype=jnp.float32)
        for mv in (False, True):
            got = contrastive_loss(scores, margin=0.2, max_violation=mv,
                                   tile_rows=tile_rows)
            jax.block_until_ready(got)
            want = _reference_loss(scores, margin=0.2, max_violation=mv)
            assert jnp.allclose(got, want, rtol=1e-4, atol=1e-3), (n, mv, got, want)

    # bf16 input path (no wrapper cast of the matrix; kernel upcasts per tile).
    for n, tile_rows in [(16, None), (40, 16)]:
        key, sub = jax.random.split(key)
        scores_bf16 = jax.random.normal(sub, (n, n), dtype=jnp.float32).astype(jnp.bfloat16)
        for mv in (False, True):
            got = contrastive_loss(scores_bf16, margin=0.2, max_violation=mv,
                                   tile_rows=tile_rows)
            jax.block_until_ready(got)
            want = _reference_loss(scores_bf16.astype(jnp.float32), margin=0.2,
                                   max_violation=mv)
            assert jnp.allclose(got, want, rtol=1e-4, atol=1e-2), (n, mv, got, want)

    print("KERNEL_OK")
</pallas_src>

<mosaic_0001>
module attributes {stable_mosaic.version = 11 : i64} {
  func.func @_sum_kernel(%arg0: i32, %arg1: memref<8x8xf32, #tpu.memory_space<vmem>>, %arg2: memref<8x1xf32, #tpu.memory_space<vmem>>, %arg3: memref<1x8xf32, #tpu.memory_space<vmem>>, %arg4: memref<1x1x8xf32, #tpu.memory_space<vmem>>) attributes {dimension_semantics = [#tpu.dimension_semantics<parallel>], iteration_bounds = array<i64: 1>, scalar_prefetch = 0 : i64, scratch_operands = 0 : i64, tpu.core_type = #tpu.core_type<tc>, window_params = [{transform_indices = @transform_0, window_bounds = array<i64: 8, 8>}, {pipeline_mode = #tpu.pipeline_mode<synchronous>, transform_indices = @transform_1, window_bounds = array<i64: 8, 1>}, {pipeline_mode = #tpu.pipeline_mode<synchronous>, transform_indices = @transform_2, window_bounds = array<i64: 1, 8>}, {transform_indices = @transform_3, window_bounds = array<i64: 1, 1, 8>}]} {
    %c0 = arith.constant 0 : index
    %c0_0 = arith.constant 0 : index
    %0 = vector.load %arg1[%c0, %c0_0] : memref<8x8xf32, #tpu.memory_space<vmem>>, vector<8x8xf32>
    %c8_i32 = arith.constant 8 : i32
    %1 = arith.muli %arg0, %c8_i32 : i32
    %2 = tpu.assume_multiple %1, 8 : i32
    %3 = arith.index_cast %2 : i32 to index
    %c0_1 = arith.constant 0 : index
    %4 = vector.load %arg2[%3, %c0_1] : memref<8x1xf32, #tpu.memory_space<vmem>>, vector<8x1xf32>
    %c0_2 = arith.constant 0 : index
    %c0_3 = arith.constant 0 : index
    %5 = vector.load %arg3[%c0_2, %c0_3] : memref<1x8xf32, #tpu.memory_space<vmem>>, vector<1x8xf32>
    %6 = vector.broadcast %4 : vector<8x1xf32> to vector<8x8xf32>
    %7 = arith.subf %0, %6 : vector<8x8xf32>
    %cst = arith.constant 0.000000e+00 : f32
    %8 = vector.broadcast %cst : f32 to vector<8x8xf32>
    %9 = arith.maximumf %7, %8 : vector<8x8xf32>
    %10 = vector.broadcast %5 : vector<1x8xf32> to vector<8x8xf32>
    %11 = arith.subf %0, %10 : vector<8x8xf32>
    %cst_4 = arith.constant 0.000000e+00 : f32
    %12 = vector.broadcast %cst_4 : f32 to vector<8x8xf32>
    %13 = arith.maximumf %11, %12 : vector<8x8xf32>
    %14 = arith.addf %9, %13 : vector<8x8xf32>
    %cst_5 = arith.constant dense<0.000000e+00> : vector<8xf32>
    %15 = vector.multi_reduction <add>, %14, %cst_5 [0] : vector<8x8xf32> to vector<8xf32>
    %16 = vector.shape_cast %15 : vector<8xf32> to vector<1x8xf32>
    %17 = vector.shape_cast %16 : vector<1x8xf32> to vector<1x1x8xf32>
    %c0_6 = arith.constant 0 : index
    %c0_7 = arith.constant 0 : index
    %c0_8 = arith.constant 0 : index
    %18 = vector.load %arg4[%c0_6, %c0_7, %c0_8] : memref<1x1x8xf32, #tpu.memory_space<vmem>>, vector<1x1x8xf32>
    tpu.vector_store %arg4[%c0_6, %c0_7, %c0_8], %17 {strides = array<i32>} : memref<1x1x8xf32, #tpu.memory_space<vmem>>, vector<1x1x8xf32>,
    return
  }
  func.func @transform_0(%arg0: i32) -> (i32, i32) {
    %c0_i32 = arith.constant 0 : i32
    %c0_i32_0 = arith.constant 0 : i32
    return %arg0, %c0_i32 : i32, i32
  }
  func.func @transform_1(%arg0: i32) -> (i32, i32) {
    %c0_i32 = arith.constant 0 : i32
    %c0_i32_0 = arith.constant 0 : i32
    %c0_i32_1 = arith.constant 0 : i32
    return %c0_i32, %c0_i32_0 : i32, i32
  }
  func.func @transform_2(%arg0: i32) -> (i32, i32) {
    %c0_i32 = arith.constant 0 : i32
    %c0_i32_0 = arith.constant 0 : i32
    %c0_i32_1 = arith.constant 0 : i32
    return %c0_i32, %c0_i32_0 : i32, i32
  }
  func.func @transform_3(%arg0: i32) -> (i32, i32, i32) {
    %c0_i32 = arith.constant 0 : i32
    %c0_i32_0 = arith.constant 0 : i32
    %c0_i32_1 = arith.constant 0 : i32
    return %arg0, %c0_i32, %c0_i32_0 : i32, i32, i32
  }
}

</mosaic_0001>

<bundles_post_ra>
// kernel: tpu_custom_call.1
= control target key start
LH: loop header
LB: loop body
LE: loop exit
PB: predicated region body
PF: predicated region fallthrough
CT: control target
= control target key end

     0   :  { %v86_v1 = vmov 0   ;;  %s120_s0 = inlined_call_operand.vmem [shape: f32[8,8], index: 0, kind: input, shape index: {}]   ;;  %s121_s1 = inlined_call_operand.vmem [shape: f32[8,1], index: 1, kind: input, shape index: {}]   ;;  %s122_s2 = inlined_call_operand.vmem [shape: f32[1,8], index: 2, kind: input, shape index: {}]   ;;  %s123_s3 = inlined_call_operand.hbm [shape: f32[1,1,8], index: 3, kind: output, shape index: {}]  }
   0x1   :  { %v18_v0 = vld [vmem:[%s121_s1] sm:$0xff]  ;;  %63 = vset.pattern.permute.xlu0 %v86_v1 }
   0x2   :  { %8 = vsyncpa [#allocation3], 0  ;;  %22 = vperm.xlu0 %63, %v18_v0   ;;  %v60_v2 = vld [vmem:[%s122_s2] ss:$0 sm:$0xff]  ;;  %vm36_vm0 = vcmask 64512   ;;  %s87_s1 = smov [#allocation2]  }
   0x3   :  { %v15_v3 = vld [vmem:[%s120_s0] sm:$0xff]  ;;  %s52_s18 = sshll.u32 %s87_s1, 4  ;;  %vm44_vm1 = vcmask 57344   ;;  %s53_s18 = int_to_ptr.vmem [resolvable:$true] %s52_s18 }
   0x4   :  { %v33_v4 = vsub.f32 %v15_v3, %v60_v2  ;;  %s64_s0 = scalar_lea.vmem %s53_s18, 16  ;;  %s68_s2 = scalar_lea.vmem %s53_s18, 32 }
   0x5   :  { %p65_p0 = scmp.ne.s32.totalorder %s53_s18, %s64_s0  ;;  %p69_p1 = scmp.lt.s32.totalorder %s53_s18, %s53_s18 }
   0x6   :  { %v34_v7 = vmax.f32 %v33_v4, 0.0  ;;  %p70_p2 = scmp.lt.s32.totalorder %s68_s2, %s64_s0 }
   0x8   :  { %p71_p3 = por %p70_p2, %p69_p1 }
   0xa   :  { %p72_p4 = pnand %p71_p3, %p65_p0 }
  0x7d   :  { %v23_v5 = vpop.permute.xlu0 %22 }
  0x7e   :  { %v25_v6 = vsub.f32 %v15_v3, %v23_v5 }
  0x80   :  { %v26_v8 = vmax.f32 %v25_v6, 0.0 }
  0x82   :  { %v35_v9 = vadd.f32 %v34_v7, %v26_v8 }
  0x84   :  { %v37_v10 = vsel %vm36_vm0, %v35_v9, 0.0 }
  0x85   :  { %v38_v11 = vrot.slane %v37_v10, 4 }
  0x87   :  { %v39_v12 = vadd.f32 %v38_v11, %v37_v10 }
  0x89   :  { %v40_v13 = vrot.slane %v39_v12, 2 }
  0x8b   :  { %v41_v14 = vadd.f32 %v40_v13, %v39_v12 }
  0x8d   :  { %v42_v15 = vrot.slane %v41_v14, 1 }
  0x8f   :  { %v43_v16 = vadd.f32 %v42_v15, %v41_v14 }
  0x91   :  { %45 = vst.msk [vmem:[#allocation2] sm:$0x1] %vm44_vm1, %v43_v16 }
  0x92   :  { %75 = shalt.err (!%p72_p4)
}
  0x93   :  { %55 = dma.vmem_to_hbm [thread:$0]  %s53_s18, 16, %s123_s3, [#allocation3]  }
  0x94   :  { %84 = dma.done.wait [#allocation3], 16  }
  0x95   :  { %85 = vsyncadd [#allocation3], 4294967280 }
  0x96   :  { %59 = vsyncpa [#allocation3], 1 }

</bundles_post_ra>
